<compile_context>
chip_gen: v7x
topology: tpu7x:2x2x1
jax: 0.10.0
libtpu: 0.0.40
codegen_flags: <defaults>
</compile_context>

<pallas_src>
import functools
import math

import jax
import jax.numpy as jnp
from jax.experimental import pallas as pl
from jax.experimental.pallas import tpu as pltpu


_COMPUTE_DTYPE = jnp.bfloat16          # MXU operand dtype (f32 accumulation)
_VMEM_LIMIT = 48 * 1024 * 1024         # comfortably under every generation's physical VMEM


def _round_up(x, m):
    return ((x + m - 1) // m) * m


# ----------------------------------------------------------------------------
# Exact (erf) GELU built only from ops guaranteed to lower in Mosaic.
# ----------------------------------------------------------------------------
def _erf_f32(x):
    # Abramowitz & Stegun 7.1.26, |err| <= 1.5e-7 (~ f32 precision).
    p = 0.3275911
    a1, a2, a3, a4, a5 = (0.254829592, -0.284496736, 1.421413741,
                          -1.453152027, 1.061405429)
    ax = jnp.abs(x)
    t = 1.0 / (1.0 + p * ax)
    poly = ((((a5 * t + a4) * t + a3) * t + a2) * t + a1) * t
    y = 1.0 - poly * jnp.exp(-ax * ax)
    return jnp.where(x >= 0.0, y, -y)


def _gelu_exact_kernelside(x):
    # Matches torch.nn.GELU() default (erf-based) to ~1e-7 in float32.
    return 0.5 * x * (1.0 + _erf_f32(x * 0.7071067811865476))


# ----------------------------------------------------------------------------
# Stage 1 kernel: squared pairwise token similarities for one query image.
#   out[q, w*mp + i, j] = (<proto[w, i, :], query[q, j, :]>)^2
# ----------------------------------------------------------------------------
def _s2_kernel(q_ref, s_ref, o_ref):
    s = jax.lax.dot_general(
        s_ref[...], q_ref[0],
        (((1,), (1,)), ((), ())),
        preferred_element_type=jnp.float32)            # (n_way*mp, mp) f32 (MXU)
    o_ref[0] = (s * s).astype(o_ref.dtype)


def _pairwise_sq(query_p, proto_flat, n_way, mp, cp):
    q_pad = query_p.shape[0]
    return pl.pallas_call(
        _s2_kernel,
        out_shape=jax.ShapeDtypeStruct((q_pad, n_way * mp, mp), _COMPUTE_DTYPE),
        grid=(q_pad,),
        in_specs=[
            pl.BlockSpec((1, mp, cp), lambda q: (q, 0, 0)),          # one query / step
            pl.BlockSpec((n_way * mp, cp), lambda q: (0, 0)),        # prototypes resident
        ],
        out_specs=pl.BlockSpec((1, n_way * mp, mp), lambda q: (q, 0, 0)),
        compiler_params=pltpu.CompilerParams(
            dimension_semantics=("parallel",),
            vmem_limit_bytes=_VMEM_LIMIT),
    )(query_p, proto_flat)


# ----------------------------------------------------------------------------
# Stage 2 kernel: fc2 MLP as a single batched GEMM over all (query, way) rows,
# K-tiled over the grid with an f32 accumulator (init / finalize via pl.when).
# ----------------------------------------------------------------------------
def _fc2_kernel(s2_ref, w1_ref, b1_ref, w2_ref, b2_ref, o_ref, acc_ref):
    k = pl.program_id(0)

    @pl.when(k == 0)
    def _():
        acc_ref[...] = jnp.zeros_like(acc_ref)

    acc_ref[...] += jax.lax.dot_general(
        s2_ref[...], w1_ref[...],
        (((1,), (0,)), ((), ())),
        preferred_element_type=jnp.float32)            # (R, H) f32 accumulation

    @pl.when(k == pl.num_programs(0) - 1)
    def _():
        h = _gelu_exact_kernelside(acc_ref[...] + b1_ref[...])       # (R, H)
        score = jnp.sum(h * w2_ref[...], axis=1, keepdims=True) + b2_ref[...]
        o_ref[...] = score.astype(o_ref.dtype)


def _fc2_scores(s2_flat, w1_t, b1_row, w2_row, b2_11, tk):
    r, k_total = s2_flat.shape
    h = w1_t.shape[1]
    nk = k_total // tk
    return pl.pallas_call(
        _fc2_kernel,
        out_shape=jax.ShapeDtypeStruct((r, 1), jnp.float32),
        grid_spec=pltpu.PrefetchScalarGridSpec(
            num_scalar_prefetch=0,
            grid=(nk,),
            in_specs=[
                pl.BlockSpec((r, tk), lambda i: (0, i)),     # S2 rows, K-sliced
                pl.BlockSpec((tk, h), lambda i: (i, 0)),     # W1 streamed in K tiles
                pl.BlockSpec((1, h), lambda i: (0, 0)),      # b1, lane-major
                pl.BlockSpec((1, h), lambda i: (0, 0)),      # w2, lane-major
                pl.BlockSpec((1, 1), lambda i: (0, 0)),      # b2
            ],
            out_specs=pl.BlockSpec((r, 1), lambda i: (0, 0)),
            scratch_shapes=[pltpu.VMEM((r, h), jnp.float32)],
        ),
        compiler_params=pltpu.CompilerParams(
            dimension_semantics=("arbitrary",),
            vmem_limit_bytes=_VMEM_LIMIT),
    )(s2_flat, w1_t, b1_row, w2_row, b2_11)


# ----------------------------------------------------------------------------
# Pallas-backed score head (replaces the per-query torch loop + fc2 Mlp).
# ----------------------------------------------------------------------------
def cpea_scores_pallas(query_img, shot_proto, w1, b1, w2, b2):
    """query_img: (Q, m, c); shot_proto: (n_way, m, c); fc2 params in PyTorch layout."""
    q_n, m, c = query_img.shape
    n_way = shot_proto.shape[0]
    hid = b1.shape[0]

    mp = _round_up(m, 16)            # token dim -> sublane-aligned (and 16*mp % 128 == 0)
    cp = _round_up(c, 128)           # channel dim -> lane-aligned
    q_pad = _round_up(q_n, 8)        # so Q_pad * n_way is a multiple of 8

    q_p = jnp.pad(query_img, ((0, q_pad - q_n), (0, mp - m), (0, cp - c)))
    s_p = jnp.pad(shot_proto, ((0, 0), (0, mp - m), (0, cp - c)))
    q_p = q_p.astype(_COMPUTE_DTYPE)
    s_flat = s_p.reshape(n_way * mp, cp).astype(_COMPUTE_DTYPE)

    # fc2.fc1 weight (H, m*m) -> zero-padded, transposed (mp*mp, H) so the flattened-S2
    # GEMM contracts over index i*mp + j (matches torch's .flatten(1) ordering).
    w1_3d = w1.reshape(hid, m, m)
    w1_pad = jnp.zeros((hid, mp, mp), w1.dtype).at[:, :m, :m].set(w1_3d)
    w1_t = w1_pad.reshape(hid, mp * mp).T.astype(_COMPUTE_DTYPE)     # (K, H)

    # Stage 1 (Pallas): squared pairwise similarities, bf16.
    s2 = _pairwise_sq(q_p, s_flat, n_way, mp, cp)      # (Q_pad, n_way*mp, mp)

    # Free row-major bitcast between the two kernels.
    s2_flat = s2.reshape(q_pad * n_way, mp * mp)

    # Stage 2 (Pallas): batched fc2 MLP over all (query, way) rows.
    tk = 16 * mp                                        # divides mp*mp, multiple of 128
    scores_flat = _fc2_scores(
        s2_flat, w1_t,
        b1.reshape(1, hid).astype(jnp.float32),
        w2.reshape(1, hid).astype(jnp.float32),
        b2.reshape(1, 1).astype(jnp.float32),
        tk)                                             # (Q_pad*n_way, 1)

    return scores_flat.reshape(q_pad, n_way)[:q_n]


# Pure-JAX reference for the same score head (f32) -- used only for a sanity check.
def cpea_scores_ref(query_img, shot_proto, w1, b1, w2, b2):
    def one(qf):
        s = jnp.einsum('wic,jc->wij', shot_proto, qf)
        flat = (s * s).reshape(s.shape[0], -1)
        h = jax.nn.gelu(flat @ w1.T + b1, approximate=False)
        return (h @ w2.T + b2)[:, 0]
    return jax.vmap(one)(query_img)


# ----------------------------------------------------------------------------
# Plain-JAX glue (matches CPEA.forward pre-processing; eval mode).
# ----------------------------------------------------------------------------
def _linear(x, w, b):
    return x @ w.T + b


def _mlp(x, p):
    # Mlp.forward; Dropout(0.1) is identity in eval mode.
    h = _linear(x, p["fc1_w"], p["fc1_b"])
    h = jax.nn.gelu(h, approximate=False)
    return _linear(h, p["fc2_w"], p["fc2_b"])


def _layer_norm(x, gamma, beta, eps=1e-5):
    mu = jnp.mean(x, axis=-1, keepdims=True)
    var = jnp.mean(jnp.square(x - mu), axis=-1, keepdims=True)
    return (x - mu) * jax.lax.rsqrt(var + eps) * gamma + beta


def _l2_normalize(x, axis, eps=1e-12):
    n = jnp.sqrt(jnp.sum(jnp.square(x), axis=axis, keepdims=True))
    return x / jnp.maximum(n, eps)


def cpea_forward(params, feat_shot, support_y, feat_query, query_y, *,
                 k_shot, n_way, score_fn=cpea_scores_pallas):
    del support_y  # unused by the reference forward (assumes shot-major support order)
    # (1, B, C, N, 1) -> (B, N, C)
    fq = jnp.transpose(jnp.squeeze(jnp.squeeze(feat_query, 0), -1), (0, 2, 1))
    fs = jnp.transpose(jnp.squeeze(jnp.squeeze(feat_shot, 0), -1), (0, 2, 1))
    _, n, c = fq.shape

    fq = _mlp(jnp.mean(fq, axis=1, keepdims=True), params["fc1"]) + fq
    fs = _mlp(jnp.mean(fs, axis=1, keepdims=True), params["fc1"]) + fs
    fq = _layer_norm(fq, params["ln_g"], params["ln_b"])
    fs = _layer_norm(fs, params["ln_g"], params["ln_b"])

    q_cls, q_img = fq[:, :1, :], fq[:, 1:, :]
    s_cls, s_img = fs[:, :1, :], fs[:, 1:, :]
    fq = q_img + 2.0 * q_cls
    fs = s_img + 2.0 * s_cls

    fq = _l2_normalize(fq, 2)
    fq = fq - jnp.mean(fq, axis=2, keepdims=True)

    fs = fs.reshape(k_shot, -1, n - 1, c).mean(axis=0)   # (n_way, n-1, c), shot-major
    fs = _l2_normalize(fs, 2)
    fs = fs - jnp.mean(fs, axis=2, keepdims=True)

    scores = score_fn(
        fq, fs,
        params["fc2"]["fc1_w"], params["fc2"]["fc1_b"],
        params["fc2"]["fc2_w"], params["fc2"]["fc2_b"])

    # Eval branch of the reference module (rewards).
    # TODO(synk): training branch (active dropout + label-smoothed CE loss) not exercised.
    query_y = query_y.reshape(scores.shape[0])
    preds = jnp.argmax(scores, axis=1)
    rewards = (preds == query_y).astype(jnp.int32)
    return scores, rewards


# ----------------------------------------------------------------------------
# Deterministic synthetic parameters (shapes per CPEA.__init__, scaled down)
# ----------------------------------------------------------------------------
def _init_linear(key, out_f, in_f):
    kw, kb = jax.random.split(key)
    bound = 1.0 / math.sqrt(in_f)
    w = jax.random.uniform(kw, (out_f, in_f), jnp.float32, -bound, bound)
    b = jax.random.uniform(kb, (out_f,), jnp.float32, -bound, bound)
    return w, b


def init_params(key, c, m, hidden1, hidden2):
    ks = jax.random.split(key, 4)
    fc1_w1, fc1_b1 = _init_linear(ks[0], hidden1, c)      # Mlp fc1: c -> c/4
    fc1_w2, fc1_b2 = _init_linear(ks[1], c, hidden1)      # Mlp fc2: c/4 -> c
    fc2_w1, fc2_b1 = _init_linear(ks[2], hidden2, m * m)  # Mlp fc1: m^2 -> H
    fc2_w2, fc2_b2 = _init_linear(ks[3], 1, hidden2)      # Mlp fc2: H -> 1
    return {
        "fc1": {"fc1_w": fc1_w1, "fc1_b": fc1_b1, "fc2_w": fc1_w2, "fc2_b": fc1_b2},
        "ln_g": jnp.ones((c,), jnp.float32),
        "ln_b": jnp.zeros((c,), jnp.float32),
        "fc2": {"fc1_w": fc2_w1, "fc1_b": fc2_b1, "fc2_w": fc2_w2, "fc2_b": fc2_b2},
    }


if __name__ == "__main__":
    # Small stand-ins for the real sizes (c=384, n=197, fc2 hidden=256, n_way=5).
    C = 32            # channels
    N_TOK = 17        # 1 cls token + 16 image tokens
    M = N_TOK - 1     # image tokens per sample
    N_WAY, K_SHOT = 2, 2
    Q = 4             # number of query images
    H1 = C // 4       # fc1 Mlp hidden
    H2 = 64           # fc2 Mlp hidden

    root = jax.random.PRNGKey(0)
    k_p, k_s, k_q, k_y = jax.random.split(root, 4)
    params = init_params(k_p, C, M, H1, H2)

    # Inputs as the PyTorch module receives them: (1, B, C, N, 1)
    feat_shot = jax.random.normal(k_s, (1, N_WAY * K_SHOT, C, N_TOK, 1), jnp.float32)
    feat_query = jax.random.normal(k_q, (1, Q, C, N_TOK, 1), jnp.float32)
    support_y = jnp.tile(jnp.arange(N_WAY, dtype=jnp.int32), K_SHOT)
    query_y = jax.random.randint(k_y, (Q,), 0, N_WAY, dtype=jnp.int32)

    scores, rewards = cpea_forward(params, feat_shot, support_y, feat_query,
                                   query_y, k_shot=K_SHOT, n_way=N_WAY)
    scores_ref, _ = cpea_forward(params, feat_shot, support_y, feat_query,
                                 query_y, k_shot=K_SHOT, n_way=N_WAY,
                                 score_fn=cpea_scores_ref)
    jax.block_until_ready((scores, rewards, scores_ref))

    # Loose tolerance: the Pallas path uses bf16 MXU operands (f32 accumulation).
    max_ref = float(jnp.max(jnp.abs(scores_ref)))
    err = float(jnp.max(jnp.abs(scores - scores_ref)))
    assert err < 2e-2 * (1.0 + max_ref), (err, max_ref)

    print("KERNEL_OK")
</pallas_src>

<mosaic_0001>
module attributes {stable_mosaic.version = 11 : i64} {
  func.func @_s2_kernel(%arg0: i32, %arg1: memref<1x16x128xbf16, #tpu.memory_space<vmem>>, %arg2: memref<32x128xbf16, #tpu.memory_space<vmem>>, %arg3: memref<1x32x16xbf16, #tpu.memory_space<vmem>>) attributes {dimension_semantics = [#tpu.dimension_semantics<parallel>], iteration_bounds = array<i64: 8>, scalar_prefetch = 0 : i64, scratch_operands = 0 : i64, tpu.core_type = #tpu.core_type<tc>, window_params = [{transform_indices = @transform_0, window_bounds = array<i64: 1, 16, 128>}, {pipeline_mode = #tpu.pipeline_mode<synchronous>, transform_indices = @transform_1, window_bounds = array<i64: 32, 128>}, {transform_indices = @transform_2, window_bounds = array<i64: 1, 32, 16>}]} {
    %c0 = arith.constant 0 : index
    %c0_0 = arith.constant 0 : index
    %0 = vector.load %arg2[%c0, %c0_0] : memref<32x128xbf16, #tpu.memory_space<vmem>>, vector<32x128xbf16>
    %c0_1 = arith.constant 0 : index
    %c0_2 = arith.constant 0 : index
    %c0_3 = arith.constant 0 : index
    %1 = vector.load %arg1[%c0_1, %c0_2, %c0_3] : memref<1x16x128xbf16, #tpu.memory_space<vmem>>, vector<1x16x128xbf16>
    %2 = vector.shape_cast %1 : vector<1x16x128xbf16> to vector<16x128xbf16>
    %cst = arith.constant dense<0.000000e+00> : vector<32x16xf32>
    %3 = tpu.matmul %0, %2, %cst {dimension_numbers = #tpu.dot_dimension_numbers<[1], [1], [0], [0], [0, 0, 1, 0], [], []>} : vector<32x128xbf16>, vector<16x128xbf16>, vector<32x16xf32> -> vector<32x16xf32>
    %4 = arith.mulf %3, %3 : vector<32x16xf32>
    %5 = arith.truncf %4 : vector<32x16xf32> to vector<32x16xbf16>
    %c0_4 = arith.constant 0 : index
    %c0_5 = arith.constant 0 : index
    %c0_6 = arith.constant 0 : index
    %6 = vector.load %arg3[%c0_4, %c0_5, %c0_6] : memref<1x32x16xbf16, #tpu.memory_space<vmem>>, vector<1x32x16xbf16>
    %7 = vector.shape_cast %6 : vector<1x32x16xbf16> to vector<32x16xbf16>
    %8 = vector.shape_cast %5 : vector<32x16xbf16> to vector<1x32x16xbf16>
    tpu.vector_store %arg3[%c0_4, %c0_5, %c0_6], %8 {strides = array<i32>} : memref<1x32x16xbf16, #tpu.memory_space<vmem>>, vector<1x32x16xbf16>,
    return
  }
  func.func @transform_0(%arg0: i32) -> (i32, i32, i32) {
    %c0_i32 = arith.constant 0 : i32
    %c0_i32_0 = arith.constant 0 : i32
    %c0_i32_1 = arith.constant 0 : i32
    return %arg0, %c0_i32, %c0_i32_0 : i32, i32, i32
  }
  func.func @transform_1(%arg0: i32) -> (i32, i32) {
    %c0_i32 = arith.constant 0 : i32
    %c0_i32_0 = arith.constant 0 : i32
    %c0_i32_1 = arith.constant 0 : i32
    return %c0_i32, %c0_i32_0 : i32, i32
  }
  func.func @transform_2(%arg0: i32) -> (i32, i32, i32) {
    %c0_i32 = arith.constant 0 : i32
    %c0_i32_0 = arith.constant 0 : i32
    %c0_i32_1 = arith.constant 0 : i32
    return %arg0, %c0_i32, %c0_i32_0 : i32, i32, i32
  }
}

</mosaic_0001>

<bundles_post_ra>
// kernel: tpu_custom_call.1
= control target key start
LH: loop header
LB: loop body
LE: loop exit
PB: predicated region body
PF: predicated region fallthrough
CT: control target
= control target key end

     0   :  { %7 = vsyncpa [#allocation3], 0  ;;  %s711_s0 = inlined_call_operand.hbm [shape: bf16[8,16,128], index: 0, kind: input, shape index: {}]   ;;  %s712_s1 = inlined_call_operand.hbm [shape: bf16[32,128], index: 1, kind: input, shape index: {}]   ;;  %s713_s2 = inlined_call_operand.vmem [shape: bf16[8,32,16], index: 2, kind: output, shape index: {}]  }
   0x1   :  { %9 = vsyncpa [#allocation3 + $0x1], 0 }
   0x2   :  { %10 = vsyncpa [#allocation5], 0  ;;  %s563_s9 = smov 0   ;;  %s565_s10 = smov 0  }
   0x3   :  { %s567_s11 = smov 0   ;;  %s569_s12 = smov 0  }
   0x4 LB: > { %s582_s13 = sadd.s32 4294967295, %s542_s12   ;;  %p36_p0 = scmp.ne.s32.totalorder %s534_s10, %s530_s9  ;;  %s542_s12 = sphi %s569_s12, %s728_s12   ;;  %s538_s11 = sphi %s567_s11, %s727_s11   ;;  %s534_s10 = sphi %s565_s10, %s726_s10   ;;  %s530_s9 = sphi %s563_s9, %s725_s9  }
   0x5   : > { %p714_p1 = scmp.eq.s32.totalorder %s582_s13, 0  ;;  %p356_p2 = scmp.ge.s32.totalorder %s542_s12, 1 }
   0x6   : > { %p94_p3 = scmp.lt.s32.totalorder %s542_s12, 9  ;;  %s544_s16 = smov [#allocation4]  }
   0x7   : > { %p590_p4 = por %p714_p1, %p36_p0  ;;  %s106_s17 = sshll.u32 %s544_s16, 4  ;;  %s107_s17 = int_to_ptr.vmem [resolvable:$true] %s106_s17 }
   0x8   : > { %p594_p5 = pnand %p356_p2, %p94_p3  ;;  %s607_s19 = sadd.s32 1, %s542_s12  }
   0x9   : > { %s717_s14 = scalar_select %p590_p4, 1, 0 }
   0xa   : > { %s718_s15 = scalar_select %p594_p5, 1, 0 }
   0xb   : > { %p397_p6 = pneg %p594_p5  ;;  %s23_s20 = sadd.s32 1, %s538_s11 }
   0xc   : > { %s20_s21 = ssub.s32 %s542_s12, %s607_s19  ;;  %s446_s24 = scalar_lea.hbm %s712_s1, 256 }
   0xd   : > { %p602_p7 = pnand %p397_p6, %p714_p1  ;;  %p447_p8 = scmp.ne.s32.totalorder %s712_s1, %s446_s24 }
   0xe   : > { %p453_p12 = scmp.lt.u32.totalorder %s446_s24, %s712_s1 }
   0xf   : > { %p448_p9 = pneg %p602_p7 }
  0x11   : > { %p449_p10 = pnand %p448_p9, %p447_p8 }
  0x13   : > { %p450_p11 = pneg %p449_p10 }
  0x15   : > { %p455_p13 = pnand %p453_p12, %p450_p11 }
  0x17   : > { %458 = shalt.err (!%p455_p13)
}
  0x18   : > { %s459_s29 = scalar_lea.vmem %s107_s17, 256  ;;  %p467_p6 = scmp.lt.s32.totalorder %s107_s17, %s107_s17 }
  0x19   : > { %p460_p0 = scmp.ne.s32.totalorder %s107_s17, %s459_s29  ;;  %p468_p1 = scmp.lt.s32.totalorder %s459_s29, %s459_s29 }
  0x1b   : > { %p462_p2 = pnand %p460_p0, %p448_p9  ;;  %p469_p4 = por %p468_p1, %p467_p6 }
  0x1d   : > { %p463_p3 = pneg %p462_p2 }
  0x1f   : > { %p470_p5 = pnand %p469_p4, %p463_p3 }
  0x21   : > { %473 = shalt.err (!%p470_p5)
}
  0x22   : > { %s545_s30 = smov 64   ;;  %s546_s3 = smov 4  }
  0x23   : > { %400 = dma.hbm_to_vmem [thread:$0]  (!%p602_p7), %s712_s1, 256, %s107_s17, [#allocation5], %s545_s30, %s545_s30, %s546_s3  }
  0x24   : > { %p21_p1 = scmp.eq.s32.totalorder %s20_s21, 0  ;;  %p30_p4 = scmp.ne.s32.totalorder %s538_s11, %s534_s10 }
  0x25   : > { %p31_p5 = scmp.eq.s32.totalorder %s542_s12, 0  ;;  %p406_p8 = scmp.lt.s32.totalorder %s542_s12, 8 }
  0x26   : > { %s636_s6 = scalar_select %p21_p1, %s538_s11, %s23_s20  }
  0x27   : > { %p32_p9 = por %p31_p5, %p30_p4  ;;  %s120_s7 = sand.u32 1, %s538_s11  }
  0x28   : > { %s359_s8 = sshll.u32 %s120_s7, 3  ;;  %s376_s9 = sshll.u32 %s542_s12, 7 }
  0x29   : > { %s643_s18 = scalar_lea.hbm %s711_s0, %s376_s9  ;;  %s124_s17 = scalar_lea.vmem [#allocation2], %s359_s8 }
  0x2a   : > { %s131_s21 = sshll.u32 %s124_s17, 4  ;;  %p647_p7 = pnand %p406_p8, %p32_p9  ;;  %s645_s21 = int_to_ptr.vmem [resolvable:$true] %s131_s21 }
  0x2b   : > { %s651_s12 = scalar_lea.sflag [#allocation3], %s120_s7  ;;  %s474_s23 = scalar_lea.hbm %s643_s18, 128 }
  0x2c   : > { %p475_p10 = scmp.ne.s32.totalorder %s643_s18, %s474_s23  ;;  %p476_p11 = pneg %p647_p7 }
  0x2d   : > { %s479_s26 = scalar_lea.hbm %s711_s0, 1024  ;;  %p480_p0 = scmp.lt.u32.totalorder %s643_s18, %s711_s0 }
  0x2e   : > { %p477_p12 = pnand %p476_p11, %p475_p10  ;;  %p481_p2 = scmp.lt.u32.totalorder %s479_s26, %s474_s23 }
  0x2f   : > { %p483_p6 = scmp.lt.u32.totalorder %s474_s23, %s643_s18 }
  0x30   : > { %p478_p13 = pneg %p477_p12  ;;  %p482_p3 = por %p481_p2, %p480_p0 }
  0x32   : > { %p484_p1 = por %p483_p6, %p482_p3 }
  0x34   : > { %p485_p4 = pnand %p484_p1, %p478_p13 }
  0x36   : > { %488 = shalt.err (!%p485_p4)
}
  0x37   : > { %s489_s29 = scalar_lea.vmem %s645_s21, 128  ;;  %s547_s4 = smov [#allocation2]  }
  0x38   : > { %p490_p5 = scmp.ne.s32.totalorder %s645_s21, %s489_s29  ;;  %s494_s5 = sshll.u32 %s547_s4, 4  ;;  %s495_s5 = int_to_ptr.vmem [resolvable:$false] %s494_s5 }
  0x39   : > { %s496_s7 = scalar_lea.vmem %s495_s5, 256  ;;  %p497_p10 = scmp.lt.s32.totalorder %s645_s21, %s495_s5 }
  0x3a   : > { %p492_p8 = pnand %p490_p5, %p476_p11  ;;  %p498_p12 = scmp.lt.s32.totalorder %s496_s7, %s489_s29 }
  0x3c   : > { %p493_p9 = pneg %p492_p8  ;;  %p499_p0 = por %p498_p12, %p497_p10 }
  0x3e   : > { %p500_p2 = pnand %p499_p0, %p493_p9 }
  0x40   : > { %503 = shalt.err (!%p500_p2)
}
  0x41   : > { %404 = dma.hbm_to_vmem [thread:$0]  (!%p647_p7), %s643_s18, 128, %s645_s21, %s651_s12, %s545_s30, %s545_s30, %s546_s3  }
  0x42   : > { %p721_p11 = scmp.ne.s32.totalorder %s718_s15, 0 }
  0x43   : > { %s145_s8 = sand.u32 (!%p721_p11), 1, %s534_s10   ;;  %p722_p13 = scmp.ne.s32.totalorder (!%p721_p11), %s717_s14, 0 }
  0x44   : > { %143 = sbr.rel (%p721_p11) target bundleno = 308 (0x134), region = 28  ;;  %s363_s9 = sshll.u32 (!%p721_p11), %s145_s8, 3 }
  0x45   : > { %s146_s16 = scalar_lea.sflag (!%p721_p11), [#allocation3], %s145_s8  ;;  %s149_s22 = scalar_lea.vmem (!%p721_p11), [#allocation2], %s363_s9 }
  0x4b   : > { %521 = dma.done.wait (%p722_p13), %s146_s16, 128  }
  0x4c   : > { %523 = vsyncadd (%p722_p13), %s146_s16, 4294967168  ;;  %p723_p3 = scmp.eq.s32.totalorder %s582_s13, 0 }
  0x4e   : > { %525 = dma.done.wait (%p723_p3), [#allocation5], 256   ;;  %p724_p6 = pmov %p723_p3 }
  0x4f   : > { %v443_v0 = vld [vmem:[%s149_s22] sm:$0xff]   ;;  %v444_v1 = vld [vmem:[#allocation4] sm:$0xff]   ;;  %v445_v2 = vld [vmem:[#allocation4 + $0x8] sm:$0xff]   ;;  %p174_p7 = scmp.lt.s32.totalorder %s582_s13, 7  ;;  %vm273_vm0 = vcmask 125952  }
  0x50   : > { %527 = vsyncadd (%p724_p6), [#allocation5], 4294967040  ;;  %385 = vmatprep.subr.bf16.mxu0 %v443_v0  ;;  %387 = vmatprep.mubr.bf16.mxu0 %v444_v1 }
  0x51   : > { %386 = vmatpush3.bf16.xpose.msra.mxu0 %v443_v0  ;;  %s730_s13 = smov (!%p174_p7, %s582_s13), 7 }
  0x52   : > { %s377_s15 = sshll.u32 %s730_s13, 4 }
  0x53   : > { %s178_s3 = scalar_lea.vmem %s713_s2, %s377_s15 }
  0x58   : > { %388 = vmatmul.mubr.bf16.vlgmr.msra.gmra.mrb[0].mxu0 %v445_v2 }
 0x12b   : > { %v389_v3 = vpop.f32.mrb[0].mxu0 }
 0x12c   : > { %v255_v4 = vmul.f32 %v389_v3, %v389_v3  ;;  %v238_v5 = vpop.f32.mrb[1].mxu0 }
 0x12d   : > { %v253_v6 = vmul.f32 %v238_v5, %v238_v5  ;;  %v390_v7 = vpop.f32.mrb[2].mxu0 }
 0x12e   : > { %v380_v8 = vpack.c.bf16 %v255_v4, %v255_v4  ;;  %v256_v9 = vmul.f32 %v390_v7, %v390_v7  ;;  %v241_v10 = vpop.f32.mrb[3].mxu0 }
 0x12f   : > { %v378_v11 = vpack.c.bf16 %v253_v6, %v253_v6  ;;  %v254_v12 = vmul.f32 %v241_v10, %v241_v10 }
 0x130   : > { %276 = vst.msk [vmem:[%s178_s3 + $0x8] sm:$0xf] %vm273_vm0, %v380_v8  ;;  %v381_v13 = vpack.c.bf16 %v256_v9, %v256_v9 }
 0x131   : > { %274 = vst.msk [vmem:[%s178_s3] sm:$0xf] %vm273_vm0, %v378_v11  ;;  %v379_v14 = vpack.c.bf16 %v254_v12, %v254_v12 }
 0x132   : > { %277 = vst.msk [vmem:[%s178_s3 + $0xc] sm:$0xf] %vm273_vm0, %v381_v13 }
 0x133   : > { %275 = vst.msk [vmem:[%s178_s3 + $0x4] sm:$0xf] %vm273_vm0, %v379_v14 }
 0x134 PF: > { %p13_p1 = scmp.ge.s32.totalorder %s607_s19, 10   ;;  %s725_s9 = smov %s534_s10 }
 0x135   : > { %s726_s10 = smov %s538_s11  ;;  %s727_s11 = smov %s636_s6 }
 0x136   : > { %s728_s12 = smov %s607_s19  ;;  %15 = sbr.rel (!%p13_p1) target bundleno = 4 (0x4), region = 72 }
 0x13d   :  { %299 = vsyncpa [#allocation3], 1 }
 0x13e   :  { %301 = vsyncpa [#allocation3 + $0x1], 1 }
 0x13f   :  { %302 = vsyncpa [#allocation5], 1 }

</bundles_post_ra>
